<compile_context>
chip_gen: v7x
topology: tpu7x:2x2x1
jax: 0.10.0
libtpu: 0.0.40
codegen_flags: <defaults>
</compile_context>

<pallas_src>
import jax
import jax.numpy as jnp
from jax.experimental import pallas as pl
from jax.experimental.pallas import tpu as pltpu

IN_FEATURES = 3 * 32 * 32   # 3072
OUT_FEATURES = 10
OUT_PAD = 128               # pad the 10 output features to one full lane group
TM_CAP = 1024               # max batch-tile rows (f32 tile = 12 MiB per buffer)


def _round_up(x, m):
    return (x + m - 1) // m * m


def fc_relu_kernel(x_ref, w_ref, b_ref, o_ref):
    # x_ref: (tm, 3072) f32 | w_ref: (3072, 128) bf16 | b_ref: (1, 128) f32
    # o_ref: (tm, 128) f32
    # Cast x to bf16 in-VMEM for the MXU; accumulate in f32; bias+ReLU in f32.
    x_bf16 = x_ref[...].astype(jnp.bfloat16)
    y = jnp.dot(x_bf16, w_ref[...], preferred_element_type=jnp.float32)
    y = y + b_ref[...]                    # bias broadcast over batch rows (f32)
    o_ref[...] = jnp.maximum(y, 0.0)      # ReLU


def _pick_batch_tile(n):
    if n < 16:
        # Single full-dim block (block dim == full array dim is always legal,
        # even when not a multiple of 8).
        return n
    # >= 2 grid steps so v7x megacore can split the batch over both TCs;
    # rows kept a multiple of 8 (f32 sublane tile), capped by the VMEM budget.
    return min(TM_CAP, _round_up(pl.cdiv(n, 2), 8))


@jax.jit
def net_forward(x_nchw, w_t_pad, b_pad):
    """x_nchw: (N, 3, 32, 32) float32 -> (N, 10) float32 (post-ReLU scores)."""
    n = x_nchw.shape[0]
    x_flat = x_nchw.reshape((n, IN_FEATURES))   # f32; no wrapper cast, no pad

    tm = _pick_batch_tile(n)
    num_blocks = pl.cdiv(n, tm)                 # ragged last block is masked

    cost = pl.CostEstimate(
        flops=2 * n * IN_FEATURES * OUT_PAD,
        bytes_accessed=(n * IN_FEATURES * 4          # x (f32, read once)
                        + IN_FEATURES * OUT_PAD * 2  # weight (bf16, resident)
                        + OUT_PAD * 4                # bias (f32)
                        + n * OUT_PAD * 4),          # output (f32)
        transcendentals=0,
    )

    out_pad = pl.pallas_call(
        fc_relu_kernel,
        out_shape=jax.ShapeDtypeStruct((n, OUT_PAD), jnp.float32),
        grid=(num_blocks,),
        in_specs=[
            pl.BlockSpec((tm, IN_FEATURES), lambda i: (i, 0)),       # batch-tiled x
            pl.BlockSpec((IN_FEATURES, OUT_PAD), lambda i: (0, 0)),  # resident W^T
            pl.BlockSpec((1, OUT_PAD), lambda i: (0, 0)),            # resident bias
        ],
        out_specs=pl.BlockSpec((tm, OUT_PAD), lambda i: (i, 0)),
        compiler_params=pltpu.CompilerParams(
            dimension_semantics=("parallel",),       # megacore split on v7x
            vmem_limit_bytes=32 * 1024 * 1024,       # allow 1024-row f32 tile on v5e
        ),
        cost_estimate=cost,
    )(x_flat, w_t_pad, b_pad)

    # Drop the 118 zero lanes.  Small separate XLA copy; negligible.
    return out_pad[:, :OUT_FEATURES]


def init_params(key):
    """Deterministic init matching nn.Linear's default U(-1/sqrt(in), 1/sqrt(in))."""
    kw, kb = jax.random.split(key)
    bound = 1.0 / jnp.sqrt(jnp.float32(IN_FEATURES))
    # torch stores weight as (out, in); we build it transposed: (in, out).
    w_t = jax.random.uniform(
        kw, (IN_FEATURES, OUT_FEATURES), jnp.float32, minval=-bound, maxval=bound
    )
    b = jax.random.uniform(
        kb, (OUT_FEATURES,), jnp.float32, minval=-bound, maxval=bound
    )
    # Pad the output-feature axis to 128 lanes (zero columns -> relu(0)=0,
    # sliced off afterwards).  Weight stored bf16 once, here, not per call.
    w_t_pad = (
        jnp.zeros((IN_FEATURES, OUT_PAD), jnp.bfloat16)
        .at[:, :OUT_FEATURES]
        .set(w_t.astype(jnp.bfloat16))
    )
    b_pad = jnp.zeros((1, OUT_PAD), jnp.float32).at[0, :OUT_FEATURES].set(b)
    return w_t_pad, b_pad, w_t, b


if __name__ == "__main__":
    key = jax.random.PRNGKey(0)
    k_x, k_p = jax.random.split(key)

    # Small batch; spatial dims implied by the module (3 * 32 * 32 flatten).
    x = jax.random.normal(k_x, (2, 3, 32, 32), dtype=jnp.float32)
    w_t_pad, b_pad, w_t, b = init_params(k_p)

    out = net_forward(x, w_t_pad, b_pad)
    out = jax.block_until_ready(out)
    assert out.shape == (2, OUT_FEATURES)

    # Reference matching MXU semantics (bf16 operands, f32 accumulation).
    x_bf = x.reshape((x.shape[0], -1)).astype(jnp.bfloat16).astype(jnp.float32)
    w_bf = w_t.astype(jnp.bfloat16).astype(jnp.float32)
    ref = jnp.maximum(x_bf @ w_bf + b, 0.0)
    assert jnp.allclose(out, ref, atol=1e-3, rtol=1e-3)

    # Loose check against the full-f32 math of the original module.
    ref_f32 = jnp.maximum(x.reshape((x.shape[0], -1)) @ w_t + b, 0.0)
    assert jnp.allclose(out, ref_f32, atol=3e-2, rtol=3e-2)

    print("KERNEL_OK")
</pallas_src>

<mosaic_0001>
module attributes {stable_mosaic.version = 11 : i64} {
  func.func @fc_relu_kernel(%arg0: i32, %arg1: memref<2x3072xf32, #tpu.memory_space<vmem>>, %arg2: memref<3072x128xbf16, #tpu.memory_space<vmem>>, %arg3: memref<1x128xf32, #tpu.memory_space<vmem>>, %arg4: memref<2x128xf32, #tpu.memory_space<vmem>>) attributes {dimension_semantics = [#tpu.dimension_semantics<parallel>], iteration_bounds = array<i64: 1>, scalar_prefetch = 0 : i64, scratch_operands = 0 : i64, tpu.core_type = #tpu.core_type<tc>, window_params = [{transform_indices = @transform_0, window_bounds = array<i64: 2, 3072>}, {pipeline_mode = #tpu.pipeline_mode<synchronous>, transform_indices = @transform_1, window_bounds = array<i64: 3072, 128>}, {pipeline_mode = #tpu.pipeline_mode<synchronous>, transform_indices = @transform_2, window_bounds = array<i64: 1, 128>}, {transform_indices = @transform_3, window_bounds = array<i64: 2, 128>}]} {
    %c0 = arith.constant 0 : index
    %c0_0 = arith.constant 0 : index
    %0 = vector.load %arg1[%c0, %c0_0] : memref<2x3072xf32, #tpu.memory_space<vmem>>, vector<2x3072xf32>
    %1 = arith.truncf %0 : vector<2x3072xf32> to vector<2x3072xbf16>
    %c0_1 = arith.constant 0 : index
    %c0_2 = arith.constant 0 : index
    %2 = vector.load %arg2[%c0_1, %c0_2] : memref<3072x128xbf16, #tpu.memory_space<vmem>>, vector<3072x128xbf16>
    %cst = arith.constant dense<0.000000e+00> : vector<2x128xf32>
    %3 = tpu.matmul %1, %2, %cst {dimension_numbers = #tpu.dot_dimension_numbers<[1], [0], [0], [1], [0, 0, 1, 1], [], []>} : vector<2x3072xbf16>, vector<3072x128xbf16>, vector<2x128xf32> -> vector<2x128xf32>
    %c0_3 = arith.constant 0 : index
    %c0_4 = arith.constant 0 : index
    %4 = vector.load %arg3[%c0_3, %c0_4] : memref<1x128xf32, #tpu.memory_space<vmem>>, vector<1x128xf32>
    %5 = vector.broadcast %4 : vector<1x128xf32> to vector<2x128xf32>
    %6 = arith.addf %3, %5 : vector<2x128xf32>
    %cst_5 = arith.constant 0.000000e+00 : f32
    %7 = vector.broadcast %cst_5 : f32 to vector<2x128xf32>
    %8 = arith.maximumf %6, %7 : vector<2x128xf32>
    %c0_6 = arith.constant 0 : index
    %c0_7 = arith.constant 0 : index
    %9 = vector.load %arg4[%c0_6, %c0_7] : memref<2x128xf32, #tpu.memory_space<vmem>>, vector<2x128xf32>
    tpu.vector_store %arg4[%c0_6, %c0_7], %8 {strides = array<i32>} : memref<2x128xf32, #tpu.memory_space<vmem>>, vector<2x128xf32>,
    return
  }
  func.func @transform_0(%arg0: i32) -> (i32, i32) {
    %c0_i32 = arith.constant 0 : i32
    %c0_i32_0 = arith.constant 0 : i32
    return %arg0, %c0_i32 : i32, i32
  }
  func.func @transform_1(%arg0: i32) -> (i32, i32) {
    %c0_i32 = arith.constant 0 : i32
    %c0_i32_0 = arith.constant 0 : i32
    %c0_i32_1 = arith.constant 0 : i32
    return %c0_i32, %c0_i32_0 : i32, i32
  }
  func.func @transform_2(%arg0: i32) -> (i32, i32) {
    %c0_i32 = arith.constant 0 : i32
    %c0_i32_0 = arith.constant 0 : i32
    %c0_i32_1 = arith.constant 0 : i32
    return %c0_i32, %c0_i32_0 : i32, i32
  }
  func.func @transform_3(%arg0: i32) -> (i32, i32) {
    %c0_i32 = arith.constant 0 : i32
    %c0_i32_0 = arith.constant 0 : i32
    return %arg0, %c0_i32 : i32, i32
  }
}

</mosaic_0001>

<bundles_post_ra>
// kernel: net_forward.1
= control target key start
LH: loop header
LB: loop body
LE: loop exit
PB: predicated region body
PF: predicated region fallthrough
CT: control target
= control target key end

     0   :  { %8 = vsyncpa [#allocation3], 0  ;;  %s3024_s0 = inlined_call_operand.vmem [shape: f32[2,3072], index: 0, kind: input, shape index: {}]   ;;  %s3025_s1 = inlined_call_operand.hbm [shape: bf16[3072,128], index: 1, kind: input, shape index: {}]   ;;  %s3026_s2 = inlined_call_operand.vmem [shape: f32[1,128], index: 2, kind: input, shape index: {}]   ;;  %s3027_s3 = inlined_call_operand.hbm [shape: f32[2,128], index: 3, kind: output, shape index: {}]  }
   0x1   :  { %9 = vsyncpa [#allocation4], 0  ;;  %s2940_s12 = smov [#allocation2]   ;;  %s2892_s16 = scalar_lea.hbm %s3025_s1, 24576 }
   0x2   :  { %s17_s13 = sshll.u32 %s2940_s12, 4  ;;  %p2893_p0 = scmp.ne.s32.totalorder %s3025_s1, %s2892_s16  ;;  %s18_s13 = int_to_ptr.vmem [resolvable:$true] %s17_s13 }
   0x3   :  { %p2896_p1 = scmp.lt.u32.totalorder %s2892_s16, %s3025_s1 }
   0x5   :  { %p2898_p2 = pnand %p2896_p1, %p2893_p0 }
   0x7   :  { %2901 = shalt.err (!%p2898_p2)
}
   0x8   :  { %s2902_s21 = scalar_lea.vmem %s18_s13, 24576  ;;  %p2907_p4 = scmp.lt.s32.totalorder %s18_s13, %s18_s13 }
   0x9   :  { %p2903_p3 = scmp.ne.s32.totalorder %s18_s13, %s2902_s21  ;;  %p2908_p5 = scmp.lt.s32.totalorder %s2902_s21, %s2902_s21 }
   0xb   :  { %p2909_p6 = por %p2908_p5, %p2907_p4 }
   0xd   :  { %p2910_p7 = pnand %p2909_p6, %p2903_p3 }
   0xf   :  { %2913 = shalt.err (!%p2910_p7)
}
  0x10   :  { %s2941_s22 = smov 64   ;;  %s2942_s23 = smov 4  }
  0x11   :  { %23 = dma.hbm_to_vmem [thread:$0]  %s3025_s1, 24576, %s18_s13, [#allocation3], %s2941_s22, %s2941_s22, %s2942_s23  }
  0x12   :  { %2936 = dma.done.wait [#allocation3], 24576  }
  0x13   :  { %2937 = vsyncadd [#allocation3], 4294942720  ;;  %v2694_v0 = vld [vmem:[#allocation2 + $0x40] sm:$0xff]   ;;  %v2698_v4 = vld [vmem:[#allocation2 + $0x48] sm:$0xff]   ;;  %v2943_v22 = vmov 1983009808   ;;  %v46_v24 = vlaneseq }
  0x14   :  { %v2695_v1 = vld [vmem:[#allocation2 + $0xc0] sm:$0xff]   ;;  %2425 = vmatprep.subr.bf16.mxu0 %v2694_v0  ;;  %v2699_v5 = vld [vmem:[#allocation2 + $0xc8] sm:$0xff]   ;;  %v2702_v8 = vld [vmem:[#allocation2 + $0x50] sm:$0xff]   ;;  %v44_v23 = vunpack.c.l.s4 %v2943_v22 }
  0x15   :  { %v2696_v2 = vld [vmem:[#allocation2] sm:$0xff]   ;;  %2447 = vmatprep.subr.bf16.mxu1 %v2695_v1  ;;  %v2700_v6 = vld [vmem:[#allocation2 + $0x8] sm:$0xff]   ;;  %v2703_v9 = vld [vmem:[#allocation2 + $0xd0] sm:$0xff]   ;;  %v47_v30 = vshrl.u32 %v46_v24, 7 }
  0x16   :  { %v2697_v3 = vld [vmem:[#allocation2 + $0x80] sm:$0xff]   ;;  %2426 = vmatpush3.bf16.msra.mxu0 %v2696_v2  ;;  %v2701_v7 = vld [vmem:[#allocation2 + $0x88] sm:$0xff]   ;;  %v2704_v10 = vld [vmem:[#allocation2 + $0x10] sm:$0xff]   ;;  %v45_v29 = vunpack.c.0.s8 %v44_v23 }
  0x17   :  { %2448 = vmatpush3.bf16.msra.mxu1 %v2697_v3  ;;  %2427 = vmatprep.subr.bf16.mxu0 %v2698_v4  ;;  %v2705_v11 = vld [vmem:[#allocation2 + $0x90] sm:$0xff]   ;;  %v2706_v12 = vld [vmem:[#allocation2 + $0x58] sm:$0xff]   ;;  %v2710_v16 = vld [vmem:[#allocation2 + $0x60] sm:$0xff]  }
  0x18   :  { %2449 = vmatprep.subr.bf16.mxu1 %v2699_v5  ;;  %v2707_v13 = vld [vmem:[#allocation2 + $0xd8] sm:$0xff]   ;;  %v2711_v17 = vld [vmem:[#allocation2 + $0xe0] sm:$0xff]   ;;  %v2714_v20 = vld [vmem:[#allocation2 + $0x68] sm:$0xff]   ;;  %v2977_v35 = vsub.s32 %v45_v29, %v47_v30 }
  0x19   :  { %v2708_v14 = vld [vmem:[#allocation2 + $0x18] sm:$0xff]   ;;  %v2712_v18 = vld [vmem:[#allocation2 + $0x20] sm:$0xff]   ;;  %v2715_v21 = vld [vmem:[#allocation2 + $0xe8] sm:$0xff]  }
  0x1a   :  { %2428 = vmatpush3.bf16.msra.mxu0 %v2700_v6  ;;  %v2709_v15 = vld [vmem:[#allocation2 + $0x98] sm:$0xff]   ;;  %v2713_v19 = vld [vmem:[#allocation2 + $0xa0] sm:$0xff]   ;;  %v2716_v25 = vld [vmem:[#allocation2 + $0x28] sm:$0xff]  }
  0x1b   :  { %2450 = vmatpush3.bf16.msra.mxu1 %v2701_v7  ;;  %2429 = vmatprep.subr.bf16.mxu0 %v2702_v8  ;;  %v2717_v26 = vld [vmem:[#allocation2 + $0xa8] sm:$0xff]   ;;  %v2718_v27 = vld [vmem:[#allocation2 + $0x70] sm:$0xff]   ;;  %v2722_v33 = vld [vmem:[#allocation2 + $0x78] sm:$0xff]  }
  0x1c   :  { %2451 = vmatprep.subr.bf16.mxu1 %v2703_v9  ;;  %v2719_v28 = vld [vmem:[#allocation2 + $0xf0] sm:$0xff]   ;;  %v2723_v34 = vld [vmem:[#allocation2 + $0xf8] sm:$0xff]   ;;  %v30_v38 = vld [vmem:[%s3024_s0] sm:$0xff] }
  0x1d   :  { %v2720_v31 = vld [vmem:[#allocation2 + $0x30] sm:$0xff]   ;;  %v2724_v36 = vld [vmem:[#allocation2 + $0x38] sm:$0xff]   ;;  %v49_v39 = vrot.slane %v30_v38, %v2977_v35  ;;  %v42_v40 = vcombine.high %v30_v38, %v30_v38  ;;  %v2727_v41 = vld [vmem:[#allocation2 + $0x140] sm:$0xff]  }
  0x1e   :  { %2430 = vmatpush3.bf16.msra.mxu0 %v2704_v10  ;;  %v2721_v32 = vld [vmem:[#allocation2 + $0xb0] sm:$0xff]   ;;  %v2725_v37 = vld [vmem:[#allocation2 + $0xb8] sm:$0xff]   ;;  %v2728_v42 = vld [vmem:[#allocation2 + $0x1c0] sm:$0xff]  }
  0x1f   :  { %2452 = vmatpush3.bf16.msra.mxu1 %v2705_v11  ;;  %2431 = vmatprep.subr.bf16.mxu0 %v2706_v12  ;;  %v57_v43 = vcombine.high %v49_v39, %v49_v39  ;;  %v56_v44 = vrot.slane %v42_v40, %v2977_v35  ;;  %v168_v45 = vpack.c.bf16 %v49_v39, %v49_v39  ;;  %v2729_v46 = vld [vmem:[#allocation2 + $0x100] sm:$0xff]   ;;  %v2731_v51 = vld [vmem:[#allocation2 + $0x148] sm:$0xff]   ;;  %v2735_v56 = vld [vmem:[#allocation2 + $0x150] sm:$0xff]  }
  0x20   :  { %2453 = vmatprep.subr.bf16.mxu1 %v2707_v13  ;;  %v2730_v49 = vld [vmem:[#allocation2 + $0x180] sm:$0xff]   ;;  %v2732_v53 = vld [vmem:[#allocation2 + $0x1c8] sm:$0xff]   ;;  %v2736_v57 = vld [vmem:[#allocation2 + $0x1d0] sm:$0xff]  }
  0x21   :  { %v169_v47 = vpack.c.bf16 %v57_v43, %v57_v43  ;;  %v58_v48 = vcombine.high %v56_v44, %v56_v44  ;;  %v170_v50 = vpack.c.bf16 %v56_v44, %v56_v44  ;;  %v2733_v54 = vld [vmem:[#allocation2 + $0x108] sm:$0xff]   ;;  %v2737_v58 = vld [vmem:[#allocation2 + $0x110] sm:$0xff]   ;;  %v2739_v60 = vld [vmem:[#allocation2 + $0x158] sm:$0xff]  }
  0x22   :  { %2432 = vmatpush3.bf16.msra.mxu0 %v2708_v14  ;;  %v2734_v55 = vld [vmem:[#allocation2 + $0x188] sm:$0xff]   ;;  %v2738_v59 = vld [vmem:[#allocation2 + $0x190] sm:$0xff]   ;;  %v2740_v61 = vld [vmem:[#allocation2 + $0x1d8] sm:$0xff]  }
  0x23   :  { %2454 = vmatpush3.bf16.msra.mxu1 %v2709_v15  ;;  %2433 = vmatprep.subr.bf16.mxu0 %v2710_v16  ;;  %v171_v52 = vpack.c.bf16 %v58_v48, %v58_v48  ;;  %v2741_v62 = vld [vmem:[#allocation2 + $0x118] sm:$0xff]   ;;  %v2743_v0 = vld [vmem:[#allocation2 + $0x160] sm:$0xff]   ;;  %v2747_v4 = vld [vmem:[#allocation2 + $0x168] sm:$0xff]  }
  0x24   :  { %2455 = vmatprep.subr.bf16.mxu1 %v2711_v17  ;;  %1767 = vmatprep.mubr.bf16.mxu0 %v169_v47  ;;  %v2742_v63 = vld [vmem:[#allocation2 + $0x198] sm:$0xff]   ;;  %v2744_v1 = vld [vmem:[#allocation2 + $0x1e0] sm:$0xff]   ;;  %v2748_v5 = vld [vmem:[#allocation2 + $0x1e8] sm:$0xff]  }
  0x25   :  { %1807 = vmatprep.mubr.bf16.mxu1 %v171_v52  ;;  %v2745_v2 = vld [vmem:[#allocation2 + $0x120] sm:$0xff]   ;;  %v2749_v6 = vld [vmem:[#allocation2 + $0x128] sm:$0xff]   ;;  %v2751_v8 = vld [vmem:[#allocation2 + $0x170] sm:$0xff]  }
  0x26   :  { %2434 = vmatpush3.bf16.msra.mxu0 %v2712_v18  ;;  %v2746_v3 = vld [vmem:[#allocation2 + $0x1a0] sm:$0xff]   ;;  %v2750_v7 = vld [vmem:[#allocation2 + $0x1a8] sm:$0xff]   ;;  %v2752_v9 = vld [vmem:[#allocation2 + $0x1f0] sm:$0xff]  }
  0x27   :  { %2456 = vmatpush3.bf16.msra.mxu1 %v2713_v19  ;;  %2435 = vmatprep.subr.bf16.mxu0 %v2714_v20  ;;  %v2753_v10 = vld [vmem:[#allocation2 + $0x130] sm:$0xff]   ;;  %v2755_v12 = vld [vmem:[#allocation2 + $0x178] sm:$0xff]   ;;  %v31_v15 = vld [vmem:[%s3024_s0 + $0x8] sm:$0xff] }
  0x28   :  { %2457 = vmatprep.subr.bf16.mxu1 %v2715_v21  ;;  %v2754_v11 = vld [vmem:[#allocation2 + $0x1b0] sm:$0xff]   ;;  %v2756_v13 = vld [vmem:[#allocation2 + $0x1f8] sm:$0xff]   ;;  %v66_v17 = vrot.slane %v31_v15, %v2977_v35  ;;  %v59_v18 = vcombine.high %v31_v15, %v31_v15  ;;  %v2760_v19 = vld [vmem:[#allocation2 + $0x240] sm:$0xff]  }
  0x29   :  { %v2757_v14 = vld [vmem:[#allocation2 + $0x138] sm:$0xff]   ;;  %v2761_v22 = vld [vmem:[#allocation2 + $0x2c0] sm:$0xff]   ;;  %v2764_v29 = vld [vmem:[#allocation2 + $0x248] sm:$0xff]  }
  0x2a   :  { %2436 = vmatpush3.bf16.msra.mxu0 %v2716_v25  ;;  %v2758_v16 = vld [vmem:[#allocation2 + $0x1b8] sm:$0xff]   ;;  %v74_v20 = vcombine.high %v66_v17, %v66_v17  ;;  %v73_v21 = vrot.slane %v59_v18, %v2977_v35  ;;  %v172_v23 = vpack.c.bf16 %v66_v17, %v66_v17  ;;  %v2762_v24 = vld [vmem:[#allocation2 + $0x200] sm:$0xff]   ;;  %v2771_v38 = vld [vmem:[#allocation2 + $0x290] sm:$0xff]  }
  0x2b   :  { %2458 = vmatpush3.bf16.msra.mxu1 %v2717_v26  ;;  %2437 = vmatprep.subr.bf16.mxu0 %v2718_v27  ;;  %v2763_v27 = vld [vmem:[#allocation2 + $0x280] sm:$0xff]   ;;  %v2772_v39 = vld [vmem:[#allocation2 + $0x258] sm:$0xff]   ;;  %v2780_v47 = vld [vmem:[#allocation2 + $0x268] sm:$0xff]  }
  0x2c   :  { %2459 = vmatprep.subr.bf16.mxu1 %v2719_v28  ;;  %v173_v25 = vpack.c.bf16 %v74_v20, %v74_v20  ;;  %v75_v26 = vcombine.high %v73_v21, %v73_v21  ;;  %v174_v28 = vpack.c.bf16 %v73_v21, %v73_v21  ;;  %v2773_v40 = vld [vmem:[#allocation2 + $0x2d8] sm:$0xff]   ;;  %v2776_v43 = vld [vmem:[#allocation2 + $0x260] sm:$0xff]   ;;  %v2781_v48 = vld [vmem:[#allocation2 + $0x2e8] sm:$0xff]  }
  0x2d   :  { %v2777_v44 = vld [vmem:[#allocation2 + $0x2e0] sm:$0xff]   ;;  %v2785_v52 = vld [vmem:[#allocation2 + $0x2f0] sm:$0xff]   ;;  %v2805_v17 = vld [vmem:[#allocation2 + $0x358] sm:$0xff]  }
  0x2e   :  { %2438 = vmatpush3.bf16.msra.mxu0 %v2720_v31  ;;  %v175_v30 = vpack.c.bf16 %v75_v26, %v75_v26  ;;  %v2765_v31 = vld [vmem:[#allocation2 + $0x2c8] sm:$0xff]   ;;  %v2803_v15 = vld [vmem:[#allocation2 + $0x310] sm:$0xff]   ;;  %v2806_v18 = vld [vmem:[#allocation2 + $0x3d8] sm:$0xff]  }
  0x2f   :  { %2460 = vmatpush3.bf16.msra.mxu1 %v2721_v32  ;;  %2439 = vmatprep.subr.bf16.mxu0 %v2722_v33  ;;  %v2766_v32 = vld [vmem:[#allocation2 + $0x208] sm:$0xff]   ;;  %v2808_v20 = vld [vmem:[#allocation2 + $0x398] sm:$0xff]   ;;  %v2809_v21 = vld [vmem:[#allocation2 + $0x360] sm:$0xff]  }
  0x30   :  { %2461 = vmatprep.subr.bf16.mxu1 %v2723_v34  ;;  %v2767_v33 = vld [vmem:[#allocation2 + $0x288] sm:$0xff]   ;;  %v2768_v34 = vld [vmem:[#allocation2 + $0x250] sm:$0xff]  }
  0x31   :  { %v2814_v26 = vld [vmem:[#allocation2 + $0x3e8] sm:$0xff]  }
  0x32   :  { %2440 = vmatpush3.bf16.msra.mxu0 %v2724_v36  ;;  %v2769_v36 = vld [vmem:[#allocation2 + $0x2d0] sm:$0xff]  }
  0x33   :  { %2462 = vmatpush3.bf16.msra.mxu1 %v2725_v37  ;;  %2469 = vmatprep.subr.bf16.mxu0 %v2727_v41  ;;  %v2770_v37 = vld [vmem:[#allocation2 + $0x210] sm:$0xff]   ;;  %v2774_v41 = vld [vmem:[#allocation2 + $0x218] sm:$0xff]  }
  0x34   :  { %2491 = vmatprep.subr.bf16.mxu1 %v2728_v42  ;;  %v2775_v42 = vld [vmem:[#allocation2 + $0x298] sm:$0xff]  }
  0x35   :  { %1768 = vmatmul.mubr.bf16.vlgmr.msra.gmra.mrb[0].mxu0 %v168_v45  ;;  %v2778_v45 = vld [vmem:[#allocation2 + $0x220] sm:$0xff]  }
  0x36   :  { %2470 = vmatpush3.bf16.msra.mxu0 %v2729_v46  ;;  %1808 = vmatmul.mubr.bf16.vlgmr.msra.gmra.mrb[0].mxu1 %v170_v50  ;;  %v2779_v46 = vld [vmem:[#allocation2 + $0x2a0] sm:$0xff]   ;;  %v2783_v50 = vld [vmem:[#allocation2 + $0x2a8] sm:$0xff]  }
  0x37   :  { %2471 = vmatprep.subr.bf16.mxu0 %v2731_v51  ;;  %2492 = vmatpush3.bf16.msra.mxu1 %v2730_v49  ;;  %v2782_v49 = vld [vmem:[#allocation2 + $0x228] sm:$0xff]   ;;  %v2784_v51 = vld [vmem:[#allocation2 + $0x270] sm:$0xff]  }
  0x38   :  { %2493 = vmatprep.subr.bf16.mxu1 %v2732_v53  ;;  %1847 = vmatprep.mubr.bf16.mxu0 %v173_v25  ;;  %v2786_v53 = vld [vmem:[#allocation2 + $0x230] sm:$0xff]   ;;  %v2813_v25 = vld [vmem:[#allocation2 + $0x368] sm:$0xff]  }
  0x39   :  { %1887 = vmatprep.mubr.bf16.mxu1 %v175_v30  ;;  %v2818_v30 = vld [vmem:[#allocation2 + $0x3f0] sm:$0xff]  }
  0x3a   :  { %2472 = vmatpush3.bf16.msra.mxu0 %v2733_v54  ;;  %v2787_v54 = vld [vmem:[#allocation2 + $0x2b0] sm:$0xff]  }
  0x3b   :  { %2473 = vmatprep.subr.bf16.mxu0 %v2735_v56  ;;  %2494 = vmatpush3.bf16.msra.mxu1 %v2734_v55  ;;  %v2788_v55 = vld [vmem:[#allocation2 + $0x278] sm:$0xff]  }
  0x3c   :  { %2495 = vmatprep.subr.bf16.mxu1 %v2736_v57  ;;  %v2789_v56 = vld [vmem:[#allocation2 + $0x2f8] sm:$0xff]  }
  0x3d   :  { %v2790_v57 = vld [vmem:[#allocation2 + $0x238] sm:$0xff]  }
  0x3e   :  { %2474 = vmatpush3.bf16.msra.mxu0 %v2737_v58  ;;  %v32_v58 = vld [vmem:[%s3024_s0 + $0x10] sm:$0xff] }
  0x3f   :  { %2475 = vmatprep.subr.bf16.mxu0 %v2739_v60  ;;  %2496 = vmatpush3.bf16.msra.mxu1 %v2738_v59  ;;  %v2791_v59 = vld [vmem:[#allocation2 + $0x2b8] sm:$0xff]   ;;  %v83_v60 = vrot.slane %v32_v58, %v2977_v35 }
  0x40   :  { %2497 = vmatprep.subr.bf16.mxu1 %v2740_v61  ;;  %v76_v61 = vcombine.high %v32_v58, %v32_v58  ;;  %v2836_v58 = vld [vmem:[#allocation2 + $0x410] sm:$0xff]  }
  0x42   :  { %2476 = vmatpush3.bf16.msra.mxu0 %v2741_v62  ;;  %v2793_v62 = vld [vmem:[#allocation2 + $0x340] sm:$0xff]  }
  0x43   :  { %2477 = vmatprep.subr.bf16.mxu0 %v2743_v0  ;;  %2498 = vmatpush3.bf16.msra.mxu1 %v2742_v63  ;;  %v91_v63 = vcombine.high %v83_v60, %v83_v60  ;;  %v90_v0 = vrot.slane %v76_v61, %v2977_v35  ;;  %v2839_v61 = vld [vmem:[#allocation2 + $0x4d8] sm:$0xff]  }
  0x44   :  { %2499 = vmatprep.subr.bf16.mxu1 %v2744_v1  ;;  %v2794_v1 = vld [vmem:[#allocation2 + $0x3c0] sm:$0xff]  }
  0x46   :  { %2478 = vmatpush3.bf16.msra.mxu0 %v2745_v2  ;;  %v176_v2 = vpack.c.bf16 %v83_v60, %v83_v60  ;;  %v2837_v60 = vld [vmem:[#allocation2 + $0x490] sm:$0xff]  }
  0x47   :  { %2479 = vmatprep.subr.bf16.mxu0 %v2747_v4  ;;  %2500 = vmatpush3.bf16.msra.mxu1 %v2746_v3  ;;  %v2795_v3 = vld [vmem:[#allocation2 + $0x300] sm:$0xff]   ;;  %v177_v4 = vpack.c.bf16 %v91_v63, %v91_v63 }
  0x48   :  { %2501 = vmatprep.subr.bf16.mxu1 %v2748_v5  ;;  %v92_v5 = vcombine.high %v90_v0, %v90_v0  ;;  %v2842_v63 = vld [vmem:[#allocation2 + $0x460] sm:$0xff]  }
  0x4a   :  { %2480 = vmatpush3.bf16.msra.mxu0 %v2749_v6  ;;  %v2796_v6 = vld [vmem:[#allocation2 + $0x380] sm:$0xff]  }
  0x4b   :  { %2481 = vmatprep.subr.bf16.mxu0 %v2751_v8  ;;  %2502 = vmatpush3.bf16.msra.mxu1 %v2750_v7  ;;  %v178_v7 = vpack.c.bf16 %v90_v0, %v90_v0  ;;  %v2797_v8 = vld [vmem:[#allocation2 + $0x348] sm:$0xff]   ;;  %v2841_v0 = vld [vmem:[#allocation2 + $0x498] sm:$0xff]  }
  0x4c   :  { %2503 = vmatprep.subr.bf16.mxu1 %v2752_v9  ;;  %v179_v9 = vpack.c.bf16 %v92_v5, %v92_v5  ;;  %v2847_v5 = vld [vmem:[#allocation2 + $0x4e8] sm:$0xff]  }
  0x4e   :  { %2482 = vmatpush3.bf16.msra.mxu0 %v2753_v10  ;;  %v2798_v10 = vld [vmem:[#allocation2 + $0x3c8] sm:$0xff]  }
  0x4f   :  { %2483 = vmatprep.subr.bf16.mxu0 %v2755_v12  ;;  %2504 = vmatpush3.bf16.msra.mxu1 %v2754_v11  ;;  %v2799_v11 = vld [vmem:[#allocation2 + $0x308] sm:$0xff]  }
  0x50   :  { %2505 = vmatprep.subr.bf16.mxu1 %v2756_v13  ;;  %v2800_v12 = vld [vmem:[#allocation2 + $0x388] sm:$0xff]   ;;  %v2801_v13 = vld [vmem:[#allocation2 + $0x350] sm:$0xff]  }
  0x52   :  { %2484 = vmatpush3.bf16.msra.mxu0 %v2757_v14  ;;  %v2802_v14 = vld [vmem:[#allocation2 + $0x3d0] sm:$0xff]  }
  0x53   :  { %2513 = vmatprep.subr.bf16.mxu0 %v2760_v19  ;;  %2506 = vmatpush3.bf16.msra.mxu1 %v2758_v16  ;;  %v2804_v16 = vld [vmem:[#allocation2 + $0x390] sm:$0xff]   ;;  %v2807_v19 = vld [vmem:[#allocation2 + $0x318] sm:$0xff]  }
  0x54   :  { %2535 = vmatprep.subr.bf16.mxu1 %v2761_v22  ;;  %v2810_v22 = vld [vmem:[#allocation2 + $0x3e0] sm:$0xff]  }
  0x55   :  { %1848 = vmatmul.mubr.bf16.vlgmr.msra.gmra.mrb[4].mxu0 %v172_v23  ;;  %v2811_v23 = vld [vmem:[#allocation2 + $0x320] sm:$0xff]  }
  0x56   :  { %2514 = vmatpush3.bf16.msra.mxu0 %v2762_v24  ;;  %1888 = vmatmul.mubr.bf16.vlgmr.msra.gmra.mrb[4].mxu1 %v174_v28  ;;  %v2812_v24 = vld [vmem:[#allocation2 + $0x3a0] sm:$0xff]   ;;  %v2816_v28 = vld [vmem:[#allocation2 + $0x3a8] sm:$0xff]  }
  0x57   :  { %2515 = vmatprep.subr.bf16.mxu0 %v2764_v29  ;;  %2536 = vmatpush3.bf16.msra.mxu1 %v2763_v27  ;;  %v2815_v27 = vld [vmem:[#allocation2 + $0x328] sm:$0xff]   ;;  %v2817_v29 = vld [vmem:[#allocation2 + $0x370] sm:$0xff]  }
  0x58   :  { %2537 = vmatprep.subr.bf16.mxu1 %v2765_v31  ;;  %1927 = vmatprep.mubr.bf16.mxu0 %v177_v4  ;;  %v2819_v31 = vld [vmem:[#allocation2 + $0x330] sm:$0xff]   ;;  %v2845_v4 = vld [vmem:[#allocation2 + $0x4a0] sm:$0xff]  }
  0x59   :  { %1967 = vmatprep.mubr.bf16.mxu1 %v179_v9  ;;  %v2851_v9 = vld [vmem:[#allocation2 + $0x4f0] sm:$0xff]  }
  0x5a   :  { %2516 = vmatpush3.bf16.msra.mxu0 %v2766_v32  ;;  %v2820_v32 = vld [vmem:[#allocation2 + $0x3b0] sm:$0xff]  }
  0x5b   :  { %2517 = vmatprep.subr.bf16.mxu0 %v2768_v34  ;;  %2538 = vmatpush3.bf16.msra.mxu1 %v2767_v33  ;;  %v2821_v33 = vld [vmem:[#allocation2 + $0x378] sm:$0xff]  }
  0x5c   :  { %2539 = vmatprep.subr.bf16.mxu1 %v2769_v36  ;;  %v2822_v34 = vld [vmem:[#allocation2 + $0x3f8] sm:$0xff]  }
  0x5d   :  { %v2823_v36 = vld [vmem:[#allocation2 + $0x338] sm:$0xff]  }
  0x5e   :  { %2518 = vmatpush3.bf16.msra.mxu0 %v2770_v37  ;;  %v33_v37 = vld [vmem:[%s3024_s0 + $0x18] sm:$0xff] }
  0x5f   :  { %2519 = vmatprep.subr.bf16.mxu0 %v2772_v39  ;;  %2540 = vmatpush3.bf16.msra.mxu1 %v2771_v38  ;;  %v100_v38 = vrot.slane %v33_v37, %v2977_v35  ;;  %v93_v39 = vcombine.high %v33_v37, %v33_v37  ;;  %v2869_v37 = vld [vmem:[#allocation2 + $0x510] sm:$0xff]  }
  0x60   :  { %2541 = vmatprep.subr.bf16.mxu1 %v2773_v40  ;;  %v2826_v40 = vld [vmem:[#allocation2 + $0x440] sm:$0xff]  }
  0x62   :  { %2520 = vmatpush3.bf16.msra.mxu0 %v2774_v41  ;;  %v2824_v41 = vld [vmem:[#allocation2 + $0x3b8] sm:$0xff]  }
  0x63   :  { %2521 = vmatprep.subr.bf16.mxu0 %v2776_v43  ;;  %2542 = vmatpush3.bf16.msra.mxu1 %v2775_v42  ;;  %v108_v42 = vcombine.high %v100_v38, %v100_v38  ;;  %v107_v43 = vrot.slane %v93_v39, %v2977_v35  ;;  %v2870_v39 = vld [vmem:[#allocation2 + $0x590] sm:$0xff]  }
  0x64   :  { %2543 = vmatprep.subr.bf16.mxu1 %v2777_v44  ;;  %v2827_v44 = vld [vmem:[#allocation2 + $0x4c0] sm:$0xff]  }
  0x66   :  { %2522 = vmatpush3.bf16.msra.mxu0 %v2778_v45  ;;  %v180_v45 = vpack.c.bf16 %v100_v38, %v100_v38  ;;  %v2871_v38 = vld [vmem:[#allocation2 + $0x558] sm:$0xff]  }
  0x67   :  { %2523 = vmatprep.subr.bf16.mxu0 %v2780_v47  ;;  %2544 = vmatpush3.bf16.msra.mxu1 %v2779_v46  ;;  %v181_v46 = vpack.c.bf16 %v108_v42, %v108_v42  ;;  %v109_v47 = vcombine.high %v107_v43, %v107_v43  ;;  %v2875_v42 = vld [vmem:[#allocation2 + $0x560] sm:$0xff]  }
  0x68   :  { %2545 = vmatprep.subr.bf16.mxu1 %v2781_v48  ;;  %v2828_v48 = vld [vmem:[#allocation2 + $0x400] sm:$0xff]  }
  0x6a   :  { %2524 = vmatpush3.bf16.msra.mxu0 %v2782_v49  ;;  %v182_v49 = vpack.c.bf16 %v107_v43, %v107_v43  ;;  %v2874_v43 = vld [vmem:[#allocation2 + $0x598] sm:$0xff]  }
  0x6b   :  { %2525 = vmatprep.subr.bf16.mxu0 %v2784_v51  ;;  %2546 = vmatpush3.bf16.msra.mxu1 %v2783_v50  ;;  %v2830_v50 = vld [vmem:[#allocation2 + $0x448] sm:$0xff]   ;;  %v183_v51 = vpack.c.bf16 %v109_v47, %v109_v47  ;;  %v2878_v47 = vld [vmem:[#allocation2 + $0x5a0] sm:$0xff]  }
  0x6c   :  { %2547 = vmatprep.subr.bf16.mxu1 %v2785_v52  ;;  %v2829_v52 = vld [vmem:[#allocation2 + $0x480] sm:$0xff]  }
  0x6e   :  { %2526 = vmatpush3.bf16.msra.mxu0 %v2786_v53  ;;  %v2831_v53 = vld [vmem:[#allocation2 + $0x4c8] sm:$0xff]  }
  0x6f   :  { %2527 = vmatprep.subr.bf16.mxu0 %v2788_v55  ;;  %2548 = vmatpush3.bf16.msra.mxu1 %v2787_v54  ;;  %v2832_v54 = vld [vmem:[#allocation2 + $0x408] sm:$0xff]   ;;  %v2834_v55 = vld [vmem:[#allocation2 + $0x450] sm:$0xff]  }
  0x70   :  { %2549 = vmatprep.subr.bf16.mxu1 %v2789_v56  ;;  %v2833_v56 = vld [vmem:[#allocation2 + $0x488] sm:$0xff]  }
  0x72   :  { %2528 = vmatpush3.bf16.msra.mxu0 %v2790_v57  ;;  %v2835_v57 = vld [vmem:[#allocation2 + $0x4d0] sm:$0xff]  }
  0x73   :  { %2557 = vmatprep.subr.bf16.mxu0 %v2793_v62  ;;  %2550 = vmatpush3.bf16.msra.mxu1 %v2791_v59  ;;  %v2838_v59 = vld [vmem:[#allocation2 + $0x458] sm:$0xff]  }
  0x74   :  { %2579 = vmatprep.subr.bf16.mxu1 %v2794_v1  ;;  %v2840_v62 = vld [vmem:[#allocation2 + $0x418] sm:$0xff]   ;;  %v2843_v1 = vld [vmem:[#allocation2 + $0x4e0] sm:$0xff]  }
  0x75   :  { %1928 = vmatmul.mubr.bf16.vlgmr.msra.gmra.mrb[8].mxu0 %v176_v2  ;;  %v2844_v2 = vld [vmem:[#allocation2 + $0x420] sm:$0xff]  }
  0x76   :  { %2558 = vmatpush3.bf16.msra.mxu0 %v2795_v3  ;;  %1968 = vmatmul.mubr.bf16.vlgmr.msra.gmra.mrb[8].mxu1 %v178_v7  ;;  %v2846_v3 = vld [vmem:[#allocation2 + $0x468] sm:$0xff]   ;;  %v2850_v7 = vld [vmem:[#allocation2 + $0x470] sm:$0xff]  }
  0x77   :  { %2559 = vmatprep.subr.bf16.mxu0 %v2797_v8  ;;  %2580 = vmatpush3.bf16.msra.mxu1 %v2796_v6  ;;  %v2848_v6 = vld [vmem:[#allocation2 + $0x428] sm:$0xff]  }
  0x78   :  { %2581 = vmatprep.subr.bf16.mxu1 %v2798_v10  ;;  %2007 = vmatprep.mubr.bf16.mxu0 %v181_v46  ;;  %v2849_v8 = vld [vmem:[#allocation2 + $0x4a8] sm:$0xff]   ;;  %v2852_v10 = vld [vmem:[#allocation2 + $0x430] sm:$0xff]  }
  0x79   :  { %2047 = vmatprep.mubr.bf16.mxu1 %v183_v51  ;;  %v2879_v46 = vld [vmem:[#allocation2 + $0x568] sm:$0xff]  }
  0x7a   :  { %2560 = vmatpush3.bf16.msra.mxu0 %v2799_v11  ;;  %v2854_v11 = vld [vmem:[#allocation2 + $0x478] sm:$0xff]   ;;  %v2882_v51 = vld [vmem:[#allocation2 + $0x5a8] sm:$0xff]  }
  0x7b   :  { %2561 = vmatprep.subr.bf16.mxu0 %v2801_v13  ;;  %2582 = vmatpush3.bf16.msra.mxu1 %v2800_v12  ;;  %v2853_v12 = vld [vmem:[#allocation2 + $0x4b0] sm:$0xff]   ;;  %v2855_v13 = vld [vmem:[#allocation2 + $0x4f8] sm:$0xff]  }
  0x7c   :  { %2583 = vmatprep.subr.bf16.mxu1 %v2802_v14  ;;  %v34_v14 = vld [vmem:[%s3024_s0 + $0x20] sm:$0xff] }
  0x7e   :  { %2562 = vmatpush3.bf16.msra.mxu0 %v2803_v15  ;;  %v2856_v15 = vld [vmem:[#allocation2 + $0x438] sm:$0xff]  }
  0x7f   :  { %2563 = vmatprep.subr.bf16.mxu0 %v2805_v17  ;;  %2584 = vmatpush3.bf16.msra.mxu1 %v2804_v16  ;;  %v117_v16 = vrot.slane %v34_v14, %v2977_v35  ;;  %v110_v17 = vcombine.high %v34_v14, %v34_v14 }
  0x80   :  { %2585 = vmatprep.subr.bf16.mxu1 %v2806_v18  ;;  %v2859_v18 = vld [vmem:[#allocation2 + $0x540] sm:$0xff]  }
  0x82   :  { %2564 = vmatpush3.bf16.msra.mxu0 %v2807_v19  ;;  %v2857_v19 = vld [vmem:[#allocation2 + $0x4b8] sm:$0xff]  }
  0x83   :  { %2565 = vmatprep.subr.bf16.mxu0 %v2809_v21  ;;  %2586 = vmatpush3.bf16.msra.mxu1 %v2808_v20  ;;  %v125_v20 = vcombine.high %v117_v16, %v117_v16  ;;  %v124_v21 = vrot.slane %v110_v17, %v2977_v35 }
  0x84   :  { %2587 = vmatprep.subr.bf16.mxu1 %v2810_v22  ;;  %v184_v22 = vpack.c.bf16 %v117_v16, %v117_v16 }
  0x86   :  { %2566 = vmatpush3.bf16.msra.mxu0 %v2811_v23  ;;  %v2860_v23 = vld [vmem:[#allocation2 + $0x5c0] sm:$0xff]  }
  0x87   :  { %2567 = vmatprep.subr.bf16.mxu0 %v2813_v25  ;;  %2588 = vmatpush3.bf16.msra.mxu1 %v2812_v24  ;;  %v185_v24 = vpack.c.bf16 %v125_v20, %v125_v20  ;;  %v126_v25 = vcombine.high %v124_v21, %v124_v21 }
  0x88   :  { %2589 = vmatprep.subr.bf16.mxu1 %v2814_v26  ;;  %v2861_v26 = vld [vmem:[#allocation2 + $0x500] sm:$0xff]  }
  0x8a   :  { %2568 = vmatpush3.bf16.msra.mxu0 %v2815_v27  ;;  %v186_v27 = vpack.c.bf16 %v124_v21, %v124_v21 }
  0x8b   :  { %2569 = vmatprep.subr.bf16.mxu0 %v2817_v29  ;;  %2590 = vmatpush3.bf16.msra.mxu1 %v2816_v28  ;;  %v2863_v28 = vld [vmem:[#allocation2 + $0x548] sm:$0xff]   ;;  %v187_v29 = vpack.c.bf16 %v126_v25, %v126_v25 }
  0x8c   :  { %2591 = vmatprep.subr.bf16.mxu1 %v2818_v30  ;;  %v2862_v30 = vld [vmem:[#allocation2 + $0x580] sm:$0xff]  }
  0x8e   :  { %2570 = vmatpush3.bf16.msra.mxu0 %v2819_v31  ;;  %v2864_v31 = vld [vmem:[#allocation2 + $0x5c8] sm:$0xff]  }
  0x8f   :  { %2571 = vmatprep.subr.bf16.mxu0 %v2821_v33  ;;  %2592 = vmatpush3.bf16.msra.mxu1 %v2820_v32  ;;  %v2865_v32 = vld [vmem:[#allocation2 + $0x508] sm:$0xff]   ;;  %v2867_v33 = vld [vmem:[#allocation2 + $0x550] sm:$0xff]  }
  0x90   :  { %2593 = vmatprep.subr.bf16.mxu1 %v2822_v34  ;;  %v2866_v34 = vld [vmem:[#allocation2 + $0x588] sm:$0xff]  }
  0x92   :  { %2572 = vmatpush3.bf16.msra.mxu0 %v2823_v36  ;;  %v2868_v36 = vld [vmem:[#allocation2 + $0x5d0] sm:$0xff]  }
  0x93   :  { %2601 = vmatprep.subr.bf16.mxu0 %v2826_v40  ;;  %2594 = vmatpush3.bf16.msra.mxu1 %v2824_v41  ;;  %v2872_v40 = vld [vmem:[#allocation2 + $0x5d8] sm:$0xff]  }
  0x94   :  { %2623 = vmatprep.subr.bf16.mxu1 %v2827_v44  ;;  %v2873_v41 = vld [vmem:[#allocation2 + $0x518] sm:$0xff]   ;;  %v2876_v44 = vld [vmem:[#allocation2 + $0x5e0] sm:$0xff]  }
  0x95   :  { %2008 = vmatmul.mubr.bf16.vlgmr.msra.gmra.mrb[12].mxu0 %v180_v45  ;;  %v2877_v45 = vld [vmem:[#allocation2 + $0x520] sm:$0xff]  }
  0x96   :  { %2602 = vmatpush3.bf16.msra.mxu0 %v2828_v48  ;;  %2048 = vmatmul.mubr.bf16.vlgmr.msra.gmra.mrb[12].mxu1 %v182_v49  ;;  %v2880_v48 = vld [vmem:[#allocation2 + $0x5e8] sm:$0xff]  }
  0x97   :  { %2603 = vmatprep.subr.bf16.mxu0 %v2830_v50  ;;  %2624 = vmatpush3.bf16.msra.mxu1 %v2829_v52  ;;  %v2881_v49 = vld [vmem:[#allocation2 + $0x528] sm:$0xff]   ;;  %v2883_v50 = vld [vmem:[#allocation2 + $0x570] sm:$0xff]  }
  0x98   :  { %2625 = vmatprep.subr.bf16.mxu1 %v2831_v53  ;;  %2087 = vmatprep.mubr.bf16.mxu0 %v185_v24  ;;  %v2884_v52 = vld [vmem:[#allocation2 + $0x5f0] sm:$0xff]  }
  0x99   :  { %2127 = vmatprep.mubr.bf16.mxu1 %v187_v29  ;;  %v2885_v53 = vld [vmem:[#allocation2 + $0x530] sm:$0xff]  }
  0x9a   :  { %2604 = vmatpush3.bf16.msra.mxu0 %v2832_v54  ;;  %v2887_v54 = vld [vmem:[#allocation2 + $0x578] sm:$0xff]  }
  0x9b   :  { %2605 = vmatprep.subr.bf16.mxu0 %v2834_v55  ;;  %2626 = vmatpush3.bf16.msra.mxu1 %v2833_v56  ;;  %v2886_v55 = vld [vmem:[#allocation2 + $0x5b0] sm:$0xff]   ;;  %v2888_v56 = vld [vmem:[#allocation2 + $0x5f8] sm:$0xff]  }
  0x9c   :  { %2627 = vmatprep.subr.bf16.mxu1 %v2835_v57  ;;  %v35_v57 = vld [vmem:[%s3024_s0 + $0x28] sm:$0xff] }
  0x9e   :  { %2606 = vmatpush3.bf16.msra.mxu0 %v2836_v58  ;;  %v2889_v58 = vld [vmem:[#allocation2 + $0x538] sm:$0xff]  }
  0x9f   :  { %2607 = vmatprep.subr.bf16.mxu0 %v2838_v59  ;;  %2628 = vmatpush3.bf16.msra.mxu1 %v2837_v60  ;;  %v134_v59 = vrot.slane %v35_v57, %v2977_v35  ;;  %v127_v60 = vcombine.high %v35_v57, %v35_v57 }
  0xa0   :  { %2629 = vmatprep.subr.bf16.mxu1 %v2839_v61  ;;  %v2890_v61 = vld [vmem:[#allocation2 + $0x5b8] sm:$0xff]  }
  0xa2   :  { %2608 = vmatpush3.bf16.msra.mxu0 %v2840_v62  ;;  %v142_v62 = vcombine.high %v134_v59, %v134_v59 }
  0xa3   :  { %2609 = vmatprep.subr.bf16.mxu0 %v2842_v63  ;;  %2630 = vmatpush3.bf16.msra.mxu1 %v2841_v0  ;;  %v141_v63 = vrot.slane %v127_v60, %v2977_v35  ;;  %v188_v0 = vpack.c.bf16 %v134_v59, %v134_v59 }
  0xa4   :  { %2631 = vmatprep.subr.bf16.mxu1 %v2843_v1  ;;  %v189_v1 = vpack.c.bf16 %v142_v62, %v142_v62 }
  0xa6   :  { %2610 = vmatpush3.bf16.msra.mxu0 %v2844_v2  ;;  %v143_v2 = vcombine.high %v141_v63, %v141_v63 }
  0xa7   :  { %2611 = vmatprep.subr.bf16.mxu0 %v2846_v3  ;;  %2632 = vmatpush3.bf16.msra.mxu1 %v2845_v4  ;;  %v190_v3 = vpack.c.bf16 %v141_v63, %v141_v63 }
  0xa8   :  { %2633 = vmatprep.subr.bf16.mxu1 %v2847_v5  ;;  %v191_v4 = vpack.c.bf16 %v143_v2, %v143_v2 }
  0xaa   :  { %2612 = vmatpush3.bf16.msra.mxu0 %v2848_v6  ;;  %v2232_v6 = vld [vmem:[%s3026_s2] ss:$0 sm:$0xff]  ;;  %s2944_s2 = smov [#allocation5]  }
  0xab   :  { %2613 = vmatprep.subr.bf16.mxu0 %v2850_v7  ;;  %2634 = vmatpush3.bf16.msra.mxu1 %v2849_v8  ;;  %s2223_s11 = sshll.u32 %s2944_s2, 4  ;;  %s2224_s11 = int_to_ptr.vmem [resolvable:$true] %s2223_s11 }
  0xac   :  { %2635 = vmatprep.subr.bf16.mxu1 %v2851_v9  ;;  %s2914_s12 = scalar_lea.vmem %s2224_s11, 32  ;;  %p2919_p9 = scmp.lt.s32.totalorder %s2224_s11, %s2224_s11 }
  0xad   :  { %p2915_p8 = scmp.ne.s32.totalorder %s2224_s11, %s2914_s12  ;;  %p2920_p10 = scmp.lt.s32.totalorder %s2914_s12, %s2914_s12 }
  0xae   :  { %2614 = vmatpush3.bf16.msra.mxu0 %v2852_v10 }
  0xaf   :  { %2615 = vmatprep.subr.bf16.mxu0 %v2854_v11  ;;  %2636 = vmatpush3.bf16.msra.mxu1 %v2853_v12  ;;  %p2921_p11 = por %p2920_p10, %p2919_p9 }
  0xb0   :  { %2637 = vmatprep.subr.bf16.mxu1 %v2855_v13 }
  0xb1   :  { %p2922_p12 = pnand %p2921_p11, %p2915_p8 }
  0xb2   :  { %2616 = vmatpush3.bf16.msra.mxu0 %v2856_v15 }
  0xb3   :  { %2645 = vmatprep.subr.bf16.mxu0 %v2859_v18  ;;  %2638 = vmatpush3.bf16.msra.mxu1 %v2857_v19 }
  0xb4   :  { %2667 = vmatprep.subr.bf16.mxu1 %v2860_v23 }
  0xb5   :  { %2088 = vmatmul.mubr.bf16.vlgmr.msra.gmra.mrb[16].mxu0 %v184_v22 }
  0xb6   :  { %2646 = vmatpush3.bf16.msra.mxu0 %v2861_v26  ;;  %2128 = vmatmul.mubr.bf16.vlgmr.msra.gmra.mrb[16].mxu1 %v186_v27 }
  0xb7   :  { %2647 = vmatprep.subr.bf16.mxu0 %v2863_v28  ;;  %2668 = vmatpush3.bf16.msra.mxu1 %v2862_v30 }
  0xb8   :  { %2669 = vmatprep.subr.bf16.mxu1 %v2864_v31  ;;  %2167 = vmatprep.mubr.bf16.mxu0 %v189_v1 }
  0xb9   :  { %2207 = vmatprep.mubr.bf16.mxu1 %v191_v4 }
  0xba   :  { %2648 = vmatpush3.bf16.msra.mxu0 %v2865_v32 }
  0xbb   :  { %2649 = vmatprep.subr.bf16.mxu0 %v2867_v33  ;;  %2670 = vmatpush3.bf16.msra.mxu1 %v2866_v34 }
  0xbc   :  { %2671 = vmatprep.subr.bf16.mxu1 %v2868_v36 }
  0xbe   :  { %2650 = vmatpush3.bf16.msra.mxu0 %v2869_v37 }
  0xbf   :  { %2651 = vmatprep.subr.bf16.mxu0 %v2871_v38  ;;  %2672 = vmatpush3.bf16.msra.mxu1 %v2870_v39 }
  0xc0   :  { %2673 = vmatprep.subr.bf16.mxu1 %v2872_v40 }
  0xc2   :  { %2652 = vmatpush3.bf16.msra.mxu0 %v2873_v41 }
  0xc3   :  { %2653 = vmatprep.subr.bf16.mxu0 %v2875_v42  ;;  %2674 = vmatpush3.bf16.msra.mxu1 %v2874_v43 }
  0xc4   :  { %2675 = vmatprep.subr.bf16.mxu1 %v2876_v44 }
  0xc6   :  { %2654 = vmatpush3.bf16.msra.mxu0 %v2877_v45 }
  0xc7   :  { %2655 = vmatprep.subr.bf16.mxu0 %v2879_v46  ;;  %2676 = vmatpush3.bf16.msra.mxu1 %v2878_v47 }
  0xc8   :  { %2677 = vmatprep.subr.bf16.mxu1 %v2880_v48 }
  0xca   :  { %2656 = vmatpush3.bf16.msra.mxu0 %v2881_v49 }
  0xcb   :  { %2657 = vmatprep.subr.bf16.mxu0 %v2883_v50  ;;  %2678 = vmatpush3.bf16.msra.mxu1 %v2882_v51 }
  0xcc   :  { %2679 = vmatprep.subr.bf16.mxu1 %v2884_v52 }
  0xce   :  { %2658 = vmatpush3.bf16.msra.mxu0 %v2885_v53 }
  0xcf   :  { %2659 = vmatprep.subr.bf16.mxu0 %v2887_v54  ;;  %2680 = vmatpush3.bf16.msra.mxu1 %v2886_v55 }
  0xd0   :  { %2681 = vmatprep.subr.bf16.mxu1 %v2888_v56 }
  0xd2   :  { %2660 = vmatpush3.bf16.msra.mxu0 %v2889_v58 }
  0xd3   :  { %2682 = vmatpush3.bf16.msra.mxu1 %v2890_v61 }
  0xd5   :  { %2168 = vmatmul.mubr.bf16.vlgmr.msra.gmra.mrb[20].mxu0 %v188_v0 }
  0xd6   :  { %2208 = vmatmul.mubr.bf16.vlgmr.msra.gmra.mrb[20].mxu1 %v190_v3 }
 0x108   :  { %v2441_v5 = vpop.f32.mrb[0].mxu0 }
 0x109   :  { %v2442_v7 = vpop.f32.mrb[1].mxu0  ;;  %v2463_v8 = vpop.f32.mrb[0].mxu1 }
 0x10a   :  { %v2443_v35 = vadd.f32 %v2442_v7, %v2441_v5  ;;  %v2444_v9 = vpop.f32.mrb[2].mxu0  ;;  %v2464_v10 = vpop.f32.mrb[1].mxu1 }
 0x10b   :  { %v2445_v11 = vpop.f32.mrb[3].mxu0  ;;  %v2465_v13 = vadd.f32 %v2464_v10, %v2463_v8  ;;  %v2466_v14 = vpop.f32.mrb[2].mxu1 }
 0x10c   :  { %v1770_v12 = vadd.f32 %v2443_v35, %v2232_v6  ;;  %v2467_v15 = vpop.f32.mrb[3].mxu1 }
 0x10e   :  { %v1810_v16 = vadd.f32 %v2465_v13, %v1770_v12 }
 0x128   :  { %v2485_v17 = vpop.f32.mrb[4].mxu0 }
 0x129   :  { %v2486_v18 = vpop.f32.mrb[5].mxu0  ;;  %v2507_v19 = vpop.f32.mrb[4].mxu1 }
 0x12a   :  { %v2487_v20 = vadd.f32 %v2486_v18, %v2485_v17  ;;  %v2488_v21 = vpop.f32.mrb[6].mxu0  ;;  %v2508_v22 = vpop.f32.mrb[5].mxu1 }
 0x12b   :  { %v2489_v23 = vpop.f32.mrb[7].mxu0  ;;  %v2509_v25 = vadd.f32 %v2508_v22, %v2507_v19  ;;  %v2510_v26 = vpop.f32.mrb[6].mxu1 }
 0x12c   :  { %v1850_v24 = vadd.f32 %v2487_v20, %v1810_v16  ;;  %v2511_v27 = vpop.f32.mrb[7].mxu1 }
 0x12e   :  { %v1890_v28 = vadd.f32 %v2509_v25, %v1850_v24 }
 0x148   :  { %v2529_v29 = vpop.f32.mrb[8].mxu0 }
 0x149   :  { %v2530_v30 = vpop.f32.mrb[9].mxu0  ;;  %v2551_v31 = vpop.f32.mrb[8].mxu1 }
 0x14a   :  { %v2531_v32 = vadd.f32 %v2530_v30, %v2529_v29  ;;  %v2532_v33 = vpop.f32.mrb[10].mxu0  ;;  %v2552_v34 = vpop.f32.mrb[9].mxu1 }
 0x14b   :  { %v2533_v36 = vpop.f32.mrb[11].mxu0  ;;  %v2553_v38 = vadd.f32 %v2552_v34, %v2551_v31  ;;  %v2554_v39 = vpop.f32.mrb[10].mxu1 }
 0x14c   :  { %v1930_v37 = vadd.f32 %v2531_v32, %v1890_v28  ;;  %v2555_v40 = vpop.f32.mrb[11].mxu1 }
 0x14e   :  { %v1970_v41 = vadd.f32 %v2553_v38, %v1930_v37 }
 0x168   :  { %v2573_v42 = vpop.f32.mrb[12].mxu0 }
 0x169   :  { %v2574_v43 = vpop.f32.mrb[13].mxu0  ;;  %v2595_v44 = vpop.f32.mrb[12].mxu1 }
 0x16a   :  { %v2575_v45 = vadd.f32 %v2574_v43, %v2573_v42  ;;  %v2576_v46 = vpop.f32.mrb[14].mxu0  ;;  %v2596_v47 = vpop.f32.mrb[13].mxu1 }
 0x16b   :  { %v2577_v48 = vpop.f32.mrb[15].mxu0  ;;  %v2597_v50 = vadd.f32 %v2596_v47, %v2595_v44  ;;  %v2598_v51 = vpop.f32.mrb[14].mxu1 }
 0x16c   :  { %v2010_v49 = vadd.f32 %v2575_v45, %v1970_v41  ;;  %v2599_v52 = vpop.f32.mrb[15].mxu1 }
 0x16e   :  { %v2050_v53 = vadd.f32 %v2597_v50, %v2010_v49 }
 0x188   :  { %v2617_v54 = vpop.f32.mrb[16].mxu0 }
 0x189   :  { %v2618_v55 = vpop.f32.mrb[17].mxu0  ;;  %v2639_v56 = vpop.f32.mrb[16].mxu1 }
 0x18a   :  { %v2619_v57 = vadd.f32 %v2618_v55, %v2617_v54  ;;  %v2620_v58 = vpop.f32.mrb[18].mxu0  ;;  %v2640_v59 = vpop.f32.mrb[17].mxu1 }
 0x18b   :  { %v2621_v60 = vpop.f32.mrb[19].mxu0  ;;  %v2641_v62 = vadd.f32 %v2640_v59, %v2639_v56  ;;  %v2642_v63 = vpop.f32.mrb[18].mxu1 }
 0x18c   :  { %v2090_v61 = vadd.f32 %v2619_v57, %v2050_v53  ;;  %v2643_v0 = vpop.f32.mrb[19].mxu1 }
 0x18e   :  { %v2130_v1 = vadd.f32 %v2641_v62, %v2090_v61 }
 0x1a8   :  { %v2661_v2 = vpop.f32.mrb[20].mxu0 }
 0x1a9   :  { %v2662_v3 = vpop.f32.mrb[21].mxu0  ;;  %v2683_v4 = vpop.f32.mrb[20].mxu1 }
 0x1aa   :  { %v2663_v5 = vadd.f32 %v2662_v3, %v2661_v2  ;;  %v2664_v6 = vpop.f32.mrb[22].mxu0  ;;  %v2684_v7 = vpop.f32.mrb[21].mxu1 }
 0x1ab   :  { %v2665_v8 = vpop.f32.mrb[23].mxu0  ;;  %v2685_v9 = vadd.f32 %v2684_v7, %v2683_v4  ;;  %v2686_v10 = vpop.f32.mrb[22].mxu1 }
 0x1ac   :  { %v2170_v35 = vadd.f32 %v2663_v5, %v2130_v1  ;;  %v2687_v11 = vpop.f32.mrb[23].mxu1 }
 0x1ae   :  { %v2210_v12 = vadd.f32 %v2685_v9, %v2170_v35 }
 0x1b0   :  { %v2215_v13 = vmax.f32 %v2210_v12, 0.0 }
 0x1b2   :  { %2216 = vst [vmem:[#allocation5] sm:$0x3] %v2215_v13 }
 0x1b3   :  { %2925 = shalt.err (!%p2922_p12)
}
 0x1b4   :  { %s2926_s15 = scalar_lea.hbm %s3027_s3, 32 }
 0x1b5   :  { %p2927_p13 = scmp.ne.s32.totalorder %s3027_s3, %s2926_s15  ;;  %p2930_p0 = scmp.lt.u32.totalorder %s2926_s15, %s3027_s3 }
 0x1b7   :  { %p2932_p1 = pnand %p2930_p0, %p2927_p13 }
 0x1b9   :  { %2935 = shalt.err (!%p2932_p1)
}
 0x1ba   :  { %2226 = dma.vmem_to_hbm [thread:$0]  %s2224_s11, 32, %s3027_s3, [#allocation4]  }
 0x1bb   :  { %2938 = dma.done.wait [#allocation4], 32  }
 0x1bc   :  { %2939 = vsyncadd [#allocation4], 4294967264 }
 0x1bd   :  { %2230 = vsyncpa [#allocation3], 1 }
 0x1be   :  { %2231 = vsyncpa [#allocation4], 1 }

</bundles_post_ra>
